<compile_context>
chip_gen: v6e
topology: v6e:2x2x1
jax: 0.10.0
libtpu: 0.0.40
codegen_flags: <defaults>
</compile_context>

<pallas_src>
import jax
import jax.numpy as jnp
from jax.experimental import pallas as pl
from jax.experimental.pallas import tpu as pltpu


def fused_conv_relu_fc_kernel(w_ref, b_ref, x_ref, fcwt_ref, fcb_ref,
                              o_ref, rows_ref):
    """One output-channel block of  fc(relu(conv1x1(x)).view(-1, 16)).

    w_ref    : (CO, CI)     f32 SMEM  conv weight (full array)
    b_ref    : (CO,)        f32 SMEM  conv bias   (full array)
    x_ref    : (CI, G, S)   f32 VMEM  input pixels, pixel p = g*S + s  (S = 16)
    fcwt_ref : (S, OUT)     f32 VMEM  fc weight, pre-transposed
    fcb_ref  : (1, OUT)     f32 VMEM  fc bias
    o_ref    : (TC*G, OUT)  f32 VMEM  output rows for this channel block
    rows_ref : (TC*G, S)    f32 VMEM  scratch: relu(conv) rows in view(-1,16) order
    """
    CI, G, S = x_ref.shape
    TCG = rows_ref.shape[0]
    TC = TCG // G
    c0 = pl.program_id(0)

    # Chunk the conv along G so only one (GB,16) x-chunk + one accumulator are live
    # at a time (no vreg spills at large spatial sizes).
    GB = 32 if G % 32 == 0 else G

    # ---- 1x1 conv + bias + relu, emitted directly in view(-1,16) row order (VPU) --
    for t in range(TC):
        co = c0 * TC + t                                  # global output channel
        w_t = [w_ref[co, ci] for ci in range(CI)]         # CI scalars in sregs
        b_t = b_ref[co]
        for g0 in range(0, G, GB):
            acc = w_t[0] * x_ref[0, g0:g0 + GB, :]
            for ci in range(1, CI):
                acc = acc + w_t[ci] * x_ref[ci, g0:g0 + GB, :]
            rows_ref[t * G + g0:t * G + g0 + GB, :] = jnp.maximum(acc + b_t, 0.0)

    # ---- fc: one MXU dot over all rows of this block; bias added exactly once -----
    o_ref[...] = (
        jnp.dot(rows_ref[...], fcwt_ref[...], preferred_element_type=jnp.float32)
        + fcb_ref[...]
    )


def model_forward(x, conv_w, conv_b, fc_w, fc_b):
    """fc(relu(conv1x1(x)).view(-1, 16)) as one fused Pallas TPU kernel."""
    N, CI, H, W = x.shape
    assert N == 1, "kernel specialised to batch 1, as in the torch script"
    CO = conv_w.shape[0]
    assert conv_w.shape == (CO, CI)
    OUT, S = fc_w.shape                       # (1000, 16)
    M = H * W
    assert M % S == 0, "H*W must be a multiple of 16 for .view(-1, 16)"
    G = M // S
    R = CO * G                                # rows of .view(-1, 16)

    x3 = x.reshape(CI, G, S)                  # free NCHW reshape
    fcwt = fc_w.T                             # (S, OUT)
    fcb = fc_b.reshape(1, OUT)                # (1, OUT)

    # ---- grid sizing: prefer 4-8 parallel steps, bound real VMEM footprint --------
    def lanes(n):
        return -(-n // 128) * 128

    def step_vmem_bytes(tc):
        return 4 * (2 * tc * G * lanes(OUT)    # output block, double-buffered
                    + 2 * CI * G * lanes(S)    # x block (16 lanes padded to 128)
                    + tc * G * lanes(S)        # rows scratch
                    + 2 * S * lanes(OUT)       # fc weight, double-buffered
                    + 2 * 8 * lanes(OUT))      # fc bias (sublane-padded)

    n_steps = min(8, CO)
    while CO % n_steps:
        n_steps -= 1
    TC = CO // n_steps
    while TC > 1 and step_vmem_bytes(TC) > (24 << 20):
        TC //= 2
    assert CO % TC == 0
    assert (TC * G) % 8 == 0 or TC * G == R
    vmem_limit = int(min(max(2 * step_vmem_bytes(TC), 16 << 20), 32 << 20))

    out = pl.pallas_call(
        fused_conv_relu_fc_kernel,
        out_shape=jax.ShapeDtypeStruct((R, OUT), jnp.float32),   # unpadded output
        grid=(CO // TC,),
        in_specs=[
            pl.BlockSpec(memory_space=pltpu.MemorySpace.SMEM),   # conv weight
            pl.BlockSpec(memory_space=pltpu.MemorySpace.SMEM),   # conv bias
            pl.BlockSpec((CI, G, S), lambda c: (0, 0, 0)),       # input (re-read)
            pl.BlockSpec((S, OUT), lambda c: (0, 0)),            # fc weight^T
            pl.BlockSpec((1, OUT), lambda c: (0, 0)),            # fc bias
        ],
        out_specs=pl.BlockSpec((TC * G, OUT), lambda c: (c, 0)),
        scratch_shapes=[pltpu.VMEM((TC * G, S), jnp.float32)],
        compiler_params=pltpu.CompilerParams(
            dimension_semantics=("parallel",),
            vmem_limit_bytes=vmem_limit),
    )(conv_w, conv_b, x3, fcwt, fcb)

    return out                                # (R, OUT): no padding, no extra slice


def reference_forward(x, conv_w, conv_b, fc_w, fc_b):
    # pure-JAX reference for verification
    v1 = jnp.einsum("oc,nchw->nohw", conv_w, x,
                    precision=jax.lax.Precision.HIGHEST)
    v1 = v1 + conv_b[None, :, None, None]
    v2 = jnp.maximum(v1, 0.0)
    v3 = v2.reshape(-1, 16)
    return v3 @ fc_w.T + fc_b


if __name__ == "__main__":
    # Small shapes consistent with the module: conv/fc fix C=16 and the fc width of 16;
    # spatial reduced from 64x64 -> 16x16 to keep the example small.
    N, C, H, W = 1, 16, 16, 16
    OUT = 1000

    key = jax.random.PRNGKey(0)
    kx, kcw, kcb, kfw, kfb = jax.random.split(key, 5)

    x = jax.random.normal(kx, (N, C, H, W), dtype=jnp.float32)
    # Deterministic synthetic parameters (Conv2d(16,16,1) weight squeezed to (16,16)).
    conv_w = jax.random.normal(kcw, (C, C), dtype=jnp.float32) * 0.1
    conv_b = jax.random.normal(kcb, (C,), dtype=jnp.float32) * 0.1
    fc_w = jax.random.normal(kfw, (OUT, C), dtype=jnp.float32) * 0.1
    fc_b = jax.random.normal(kfb, (OUT,), dtype=jnp.float32) * 0.1

    fwd = jax.jit(model_forward)
    out = jax.block_until_ready(fwd(x, conv_w, conv_b, fc_w, fc_b))

    ref = reference_forward(x, conv_w, conv_b, fc_w, fc_b)
    assert out.shape == (N * C * H * W // 16, OUT)
    assert jnp.allclose(out, ref, atol=1e-3, rtol=1e-3), \
        float(jnp.max(jnp.abs(out - ref)))

    print("KERNEL_OK")
</pallas_src>

<mosaic_0001>
module attributes {stable_mosaic.version = 11 : i64} {
  func.func @fused_conv_relu_fc_kernel(%arg0: i32, %arg1: memref<16x16xf32, #tpu.memory_space<smem>>, %arg2: memref<16xf32, #tpu.memory_space<smem>>, %arg3: memref<16x16x16xf32, #tpu.memory_space<vmem>>, %arg4: memref<16x1000xf32, #tpu.memory_space<vmem>>, %arg5: memref<1x1000xf32, #tpu.memory_space<vmem>>, %arg6: memref<32x1000xf32, #tpu.memory_space<vmem>>, %arg7: memref<32x16xf32, #tpu.memory_space<vmem>>) attributes {dimension_semantics = [#tpu.dimension_semantics<parallel>], iteration_bounds = array<i64: 8>, scalar_prefetch = 0 : i64, scratch_operands = 1 : i64, tpu.core_type = #tpu.core_type<tc>, window_params = [{transform_indices = @transform_0, window_bounds = array<i64: 16, 16>}, {transform_indices = @transform_1, window_bounds = array<i64: 16>}, {pipeline_mode = #tpu.pipeline_mode<synchronous>, transform_indices = @transform_2, window_bounds = array<i64: 16, 16, 16>}, {pipeline_mode = #tpu.pipeline_mode<synchronous>, transform_indices = @transform_3, window_bounds = array<i64: 16, 1000>}, {pipeline_mode = #tpu.pipeline_mode<synchronous>, transform_indices = @transform_4, window_bounds = array<i64: 1, 1000>}, {transform_indices = @transform_5, window_bounds = array<i64: 32, 1000>}]} {
    %c2_i32 = arith.constant 2 : i32
    %0 = arith.muli %arg0, %c2_i32 : i32
    %c0_i32 = arith.constant 0 : i32
    %1 = arith.addi %0, %c0_i32 : i32
    %2 = arith.index_cast %1 : i32 to index
    %c0 = arith.constant 0 : index
    %3 = memref.load %arg1[%2, %c0] : memref<16x16xf32, #tpu.memory_space<smem>>
    %4 = arith.index_cast %1 : i32 to index
    %c1 = arith.constant 1 : index
    %5 = memref.load %arg1[%4, %c1] : memref<16x16xf32, #tpu.memory_space<smem>>
    %6 = arith.index_cast %1 : i32 to index
    %c2 = arith.constant 2 : index
    %7 = memref.load %arg1[%6, %c2] : memref<16x16xf32, #tpu.memory_space<smem>>
    %8 = arith.index_cast %1 : i32 to index
    %c3 = arith.constant 3 : index
    %9 = memref.load %arg1[%8, %c3] : memref<16x16xf32, #tpu.memory_space<smem>>
    %10 = arith.index_cast %1 : i32 to index
    %c4 = arith.constant 4 : index
    %11 = memref.load %arg1[%10, %c4] : memref<16x16xf32, #tpu.memory_space<smem>>
    %12 = arith.index_cast %1 : i32 to index
    %c5 = arith.constant 5 : index
    %13 = memref.load %arg1[%12, %c5] : memref<16x16xf32, #tpu.memory_space<smem>>
    %14 = arith.index_cast %1 : i32 to index
    %c6 = arith.constant 6 : index
    %15 = memref.load %arg1[%14, %c6] : memref<16x16xf32, #tpu.memory_space<smem>>
    %16 = arith.index_cast %1 : i32 to index
    %c7 = arith.constant 7 : index
    %17 = memref.load %arg1[%16, %c7] : memref<16x16xf32, #tpu.memory_space<smem>>
    %18 = arith.index_cast %1 : i32 to index
    %c8 = arith.constant 8 : index
    %19 = memref.load %arg1[%18, %c8] : memref<16x16xf32, #tpu.memory_space<smem>>
    %20 = arith.index_cast %1 : i32 to index
    %c9 = arith.constant 9 : index
    %21 = memref.load %arg1[%20, %c9] : memref<16x16xf32, #tpu.memory_space<smem>>
    %22 = arith.index_cast %1 : i32 to index
    %c10 = arith.constant 10 : index
    %23 = memref.load %arg1[%22, %c10] : memref<16x16xf32, #tpu.memory_space<smem>>
    %24 = arith.index_cast %1 : i32 to index
    %c11 = arith.constant 11 : index
    %25 = memref.load %arg1[%24, %c11] : memref<16x16xf32, #tpu.memory_space<smem>>
    %26 = arith.index_cast %1 : i32 to index
    %c12 = arith.constant 12 : index
    %27 = memref.load %arg1[%26, %c12] : memref<16x16xf32, #tpu.memory_space<smem>>
    %28 = arith.index_cast %1 : i32 to index
    %c13 = arith.constant 13 : index
    %29 = memref.load %arg1[%28, %c13] : memref<16x16xf32, #tpu.memory_space<smem>>
    %30 = arith.index_cast %1 : i32 to index
    %c14 = arith.constant 14 : index
    %31 = memref.load %arg1[%30, %c14] : memref<16x16xf32, #tpu.memory_space<smem>>
    %32 = arith.index_cast %1 : i32 to index
    %c15 = arith.constant 15 : index
    %33 = memref.load %arg1[%32, %c15] : memref<16x16xf32, #tpu.memory_space<smem>>
    %34 = arith.index_cast %1 : i32 to index
    %35 = memref.load %arg2[%34] : memref<16xf32, #tpu.memory_space<smem>>
    %c0_0 = arith.constant 0 : index
    %c0_1 = arith.constant 0 : index
    %c0_2 = arith.constant 0 : index
    %36 = vector.load %arg3[%c0_0, %c0_1, %c0_2] : memref<16x16x16xf32, #tpu.memory_space<vmem>>, vector<1x16x16xf32>
    %37 = vector.shape_cast %36 : vector<1x16x16xf32> to vector<16x16xf32>
    %38 = vector.broadcast %3 : f32 to vector<16x16xf32>
    %39 = arith.mulf %38, %37 : vector<16x16xf32>
    %c1_3 = arith.constant 1 : index
    %c0_4 = arith.constant 0 : index
    %c0_5 = arith.constant 0 : index
    %40 = vector.load %arg3[%c1_3, %c0_4, %c0_5] : memref<16x16x16xf32, #tpu.memory_space<vmem>>, vector<1x16x16xf32>
    %41 = vector.shape_cast %40 : vector<1x16x16xf32> to vector<16x16xf32>
    %42 = vector.broadcast %5 : f32 to vector<16x16xf32>
    %43 = arith.mulf %42, %41 : vector<16x16xf32>
    %44 = arith.addf %39, %43 : vector<16x16xf32>
    %c2_6 = arith.constant 2 : index
    %c0_7 = arith.constant 0 : index
    %c0_8 = arith.constant 0 : index
    %45 = vector.load %arg3[%c2_6, %c0_7, %c0_8] : memref<16x16x16xf32, #tpu.memory_space<vmem>>, vector<1x16x16xf32>
    %46 = vector.shape_cast %45 : vector<1x16x16xf32> to vector<16x16xf32>
    %47 = vector.broadcast %7 : f32 to vector<16x16xf32>
    %48 = arith.mulf %47, %46 : vector<16x16xf32>
    %49 = arith.addf %44, %48 : vector<16x16xf32>
    %c3_9 = arith.constant 3 : index
    %c0_10 = arith.constant 0 : index
    %c0_11 = arith.constant 0 : index
    %50 = vector.load %arg3[%c3_9, %c0_10, %c0_11] : memref<16x16x16xf32, #tpu.memory_space<vmem>>, vector<1x16x16xf32>
    %51 = vector.shape_cast %50 : vector<1x16x16xf32> to vector<16x16xf32>
    %52 = vector.broadcast %9 : f32 to vector<16x16xf32>
    %53 = arith.mulf %52, %51 : vector<16x16xf32>
    %54 = arith.addf %49, %53 : vector<16x16xf32>
    %c4_12 = arith.constant 4 : index
    %c0_13 = arith.constant 0 : index
    %c0_14 = arith.constant 0 : index
    %55 = vector.load %arg3[%c4_12, %c0_13, %c0_14] : memref<16x16x16xf32, #tpu.memory_space<vmem>>, vector<1x16x16xf32>
    %56 = vector.shape_cast %55 : vector<1x16x16xf32> to vector<16x16xf32>
    %57 = vector.broadcast %11 : f32 to vector<16x16xf32>
    %58 = arith.mulf %57, %56 : vector<16x16xf32>
    %59 = arith.addf %54, %58 : vector<16x16xf32>
    %c5_15 = arith.constant 5 : index
    %c0_16 = arith.constant 0 : index
    %c0_17 = arith.constant 0 : index
    %60 = vector.load %arg3[%c5_15, %c0_16, %c0_17] : memref<16x16x16xf32, #tpu.memory_space<vmem>>, vector<1x16x16xf32>
    %61 = vector.shape_cast %60 : vector<1x16x16xf32> to vector<16x16xf32>
    %62 = vector.broadcast %13 : f32 to vector<16x16xf32>
    %63 = arith.mulf %62, %61 : vector<16x16xf32>
    %64 = arith.addf %59, %63 : vector<16x16xf32>
    %c6_18 = arith.constant 6 : index
    %c0_19 = arith.constant 0 : index
    %c0_20 = arith.constant 0 : index
    %65 = vector.load %arg3[%c6_18, %c0_19, %c0_20] : memref<16x16x16xf32, #tpu.memory_space<vmem>>, vector<1x16x16xf32>
    %66 = vector.shape_cast %65 : vector<1x16x16xf32> to vector<16x16xf32>
    %67 = vector.broadcast %15 : f32 to vector<16x16xf32>
    %68 = arith.mulf %67, %66 : vector<16x16xf32>
    %69 = arith.addf %64, %68 : vector<16x16xf32>
    %c7_21 = arith.constant 7 : index
    %c0_22 = arith.constant 0 : index
    %c0_23 = arith.constant 0 : index
    %70 = vector.load %arg3[%c7_21, %c0_22, %c0_23] : memref<16x16x16xf32, #tpu.memory_space<vmem>>, vector<1x16x16xf32>
    %71 = vector.shape_cast %70 : vector<1x16x16xf32> to vector<16x16xf32>
    %72 = vector.broadcast %17 : f32 to vector<16x16xf32>
    %73 = arith.mulf %72, %71 : vector<16x16xf32>
    %74 = arith.addf %69, %73 : vector<16x16xf32>
    %c8_24 = arith.constant 8 : index
    %c0_25 = arith.constant 0 : index
    %c0_26 = arith.constant 0 : index
    %75 = vector.load %arg3[%c8_24, %c0_25, %c0_26] : memref<16x16x16xf32, #tpu.memory_space<vmem>>, vector<1x16x16xf32>
    %76 = vector.shape_cast %75 : vector<1x16x16xf32> to vector<16x16xf32>
    %77 = vector.broadcast %19 : f32 to vector<16x16xf32>
    %78 = arith.mulf %77, %76 : vector<16x16xf32>
    %79 = arith.addf %74, %78 : vector<16x16xf32>
    %c9_27 = arith.constant 9 : index
    %c0_28 = arith.constant 0 : index
    %c0_29 = arith.constant 0 : index
    %80 = vector.load %arg3[%c9_27, %c0_28, %c0_29] : memref<16x16x16xf32, #tpu.memory_space<vmem>>, vector<1x16x16xf32>
    %81 = vector.shape_cast %80 : vector<1x16x16xf32> to vector<16x16xf32>
    %82 = vector.broadcast %21 : f32 to vector<16x16xf32>
    %83 = arith.mulf %82, %81 : vector<16x16xf32>
    %84 = arith.addf %79, %83 : vector<16x16xf32>
    %c10_30 = arith.constant 10 : index
    %c0_31 = arith.constant 0 : index
    %c0_32 = arith.constant 0 : index
    %85 = vector.load %arg3[%c10_30, %c0_31, %c0_32] : memref<16x16x16xf32, #tpu.memory_space<vmem>>, vector<1x16x16xf32>
    %86 = vector.shape_cast %85 : vector<1x16x16xf32> to vector<16x16xf32>
    %87 = vector.broadcast %23 : f32 to vector<16x16xf32>
    %88 = arith.mulf %87, %86 : vector<16x16xf32>
    %89 = arith.addf %84, %88 : vector<16x16xf32>
    %c11_33 = arith.constant 11 : index
    %c0_34 = arith.constant 0 : index
    %c0_35 = arith.constant 0 : index
    %90 = vector.load %arg3[%c11_33, %c0_34, %c0_35] : memref<16x16x16xf32, #tpu.memory_space<vmem>>, vector<1x16x16xf32>
    %91 = vector.shape_cast %90 : vector<1x16x16xf32> to vector<16x16xf32>
    %92 = vector.broadcast %25 : f32 to vector<16x16xf32>
    %93 = arith.mulf %92, %91 : vector<16x16xf32>
    %94 = arith.addf %89, %93 : vector<16x16xf32>
    %c12_36 = arith.constant 12 : index
    %c0_37 = arith.constant 0 : index
    %c0_38 = arith.constant 0 : index
    %95 = vector.load %arg3[%c12_36, %c0_37, %c0_38] : memref<16x16x16xf32, #tpu.memory_space<vmem>>, vector<1x16x16xf32>
    %96 = vector.shape_cast %95 : vector<1x16x16xf32> to vector<16x16xf32>
    %97 = vector.broadcast %27 : f32 to vector<16x16xf32>
    %98 = arith.mulf %97, %96 : vector<16x16xf32>
    %99 = arith.addf %94, %98 : vector<16x16xf32>
    %c13_39 = arith.constant 13 : index
    %c0_40 = arith.constant 0 : index
    %c0_41 = arith.constant 0 : index
    %100 = vector.load %arg3[%c13_39, %c0_40, %c0_41] : memref<16x16x16xf32, #tpu.memory_space<vmem>>, vector<1x16x16xf32>
    %101 = vector.shape_cast %100 : vector<1x16x16xf32> to vector<16x16xf32>
    %102 = vector.broadcast %29 : f32 to vector<16x16xf32>
    %103 = arith.mulf %102, %101 : vector<16x16xf32>
    %104 = arith.addf %99, %103 : vector<16x16xf32>
    %c14_42 = arith.constant 14 : index
    %c0_43 = arith.constant 0 : index
    %c0_44 = arith.constant 0 : index
    %105 = vector.load %arg3[%c14_42, %c0_43, %c0_44] : memref<16x16x16xf32, #tpu.memory_space<vmem>>, vector<1x16x16xf32>
    %106 = vector.shape_cast %105 : vector<1x16x16xf32> to vector<16x16xf32>
    %107 = vector.broadcast %31 : f32 to vector<16x16xf32>
    %108 = arith.mulf %107, %106 : vector<16x16xf32>
    %109 = arith.addf %104, %108 : vector<16x16xf32>
    %c15_45 = arith.constant 15 : index
    %c0_46 = arith.constant 0 : index
    %c0_47 = arith.constant 0 : index
    %110 = vector.load %arg3[%c15_45, %c0_46, %c0_47] : memref<16x16x16xf32, #tpu.memory_space<vmem>>, vector<1x16x16xf32>
    %111 = vector.shape_cast %110 : vector<1x16x16xf32> to vector<16x16xf32>
    %112 = vector.broadcast %33 : f32 to vector<16x16xf32>
    %113 = arith.mulf %112, %111 : vector<16x16xf32>
    %114 = arith.addf %109, %113 : vector<16x16xf32>
    %115 = vector.broadcast %35 : f32 to vector<16x16xf32>
    %116 = arith.addf %114, %115 : vector<16x16xf32>
    %cst = arith.constant 0.000000e+00 : f32
    %117 = vector.broadcast %cst : f32 to vector<16x16xf32>
    %118 = arith.maximumf %116, %117 : vector<16x16xf32>
    %c0_48 = arith.constant 0 : index
    %c0_49 = arith.constant 0 : index
    %119 = vector.load %arg7[%c0_48, %c0_49] : memref<32x16xf32, #tpu.memory_space<vmem>>, vector<16x16xf32>
    tpu.vector_store %arg7[%c0_48, %c0_49], %118 {strides = array<i32>} : memref<32x16xf32, #tpu.memory_space<vmem>>, vector<16x16xf32>,
    %c2_i32_50 = arith.constant 2 : i32
    %120 = arith.muli %arg0, %c2_i32_50 : i32
    %c1_i32 = arith.constant 1 : i32
    %121 = arith.addi %120, %c1_i32 : i32
    %122 = arith.index_cast %121 : i32 to index
    %c0_51 = arith.constant 0 : index
    %123 = memref.load %arg1[%122, %c0_51] : memref<16x16xf32, #tpu.memory_space<smem>>
    %124 = arith.index_cast %121 : i32 to index
    %c1_52 = arith.constant 1 : index
    %125 = memref.load %arg1[%124, %c1_52] : memref<16x16xf32, #tpu.memory_space<smem>>
    %126 = arith.index_cast %121 : i32 to index
    %c2_53 = arith.constant 2 : index
    %127 = memref.load %arg1[%126, %c2_53] : memref<16x16xf32, #tpu.memory_space<smem>>
    %128 = arith.index_cast %121 : i32 to index
    %c3_54 = arith.constant 3 : index
    %129 = memref.load %arg1[%128, %c3_54] : memref<16x16xf32, #tpu.memory_space<smem>>
    %130 = arith.index_cast %121 : i32 to index
    %c4_55 = arith.constant 4 : index
    %131 = memref.load %arg1[%130, %c4_55] : memref<16x16xf32, #tpu.memory_space<smem>>
    %132 = arith.index_cast %121 : i32 to index
    %c5_56 = arith.constant 5 : index
    %133 = memref.load %arg1[%132, %c5_56] : memref<16x16xf32, #tpu.memory_space<smem>>
    %134 = arith.index_cast %121 : i32 to index
    %c6_57 = arith.constant 6 : index
    %135 = memref.load %arg1[%134, %c6_57] : memref<16x16xf32, #tpu.memory_space<smem>>
    %136 = arith.index_cast %121 : i32 to index
    %c7_58 = arith.constant 7 : index
    %137 = memref.load %arg1[%136, %c7_58] : memref<16x16xf32, #tpu.memory_space<smem>>
    %138 = arith.index_cast %121 : i32 to index
    %c8_59 = arith.constant 8 : index
    %139 = memref.load %arg1[%138, %c8_59] : memref<16x16xf32, #tpu.memory_space<smem>>
    %140 = arith.index_cast %121 : i32 to index
    %c9_60 = arith.constant 9 : index
    %141 = memref.load %arg1[%140, %c9_60] : memref<16x16xf32, #tpu.memory_space<smem>>
    %142 = arith.index_cast %121 : i32 to index
    %c10_61 = arith.constant 10 : index
    %143 = memref.load %arg1[%142, %c10_61] : memref<16x16xf32, #tpu.memory_space<smem>>
    %144 = arith.index_cast %121 : i32 to index
    %c11_62 = arith.constant 11 : index
    %145 = memref.load %arg1[%144, %c11_62] : memref<16x16xf32, #tpu.memory_space<smem>>
    %146 = arith.index_cast %121 : i32 to index
    %c12_63 = arith.constant 12 : index
    %147 = memref.load %arg1[%146, %c12_63] : memref<16x16xf32, #tpu.memory_space<smem>>
    %148 = arith.index_cast %121 : i32 to index
    %c13_64 = arith.constant 13 : index
    %149 = memref.load %arg1[%148, %c13_64] : memref<16x16xf32, #tpu.memory_space<smem>>
    %150 = arith.index_cast %121 : i32 to index
    %c14_65 = arith.constant 14 : index
    %151 = memref.load %arg1[%150, %c14_65] : memref<16x16xf32, #tpu.memory_space<smem>>
    %152 = arith.index_cast %121 : i32 to index
    %c15_66 = arith.constant 15 : index
    %153 = memref.load %arg1[%152, %c15_66] : memref<16x16xf32, #tpu.memory_space<smem>>
    %154 = arith.index_cast %121 : i32 to index
    %155 = memref.load %arg2[%154] : memref<16xf32, #tpu.memory_space<smem>>
    %c0_67 = arith.constant 0 : index
    %c0_68 = arith.constant 0 : index
    %c0_69 = arith.constant 0 : index
    %156 = vector.load %arg3[%c0_67, %c0_68, %c0_69] : memref<16x16x16xf32, #tpu.memory_space<vmem>>, vector<1x16x16xf32>
    %157 = vector.shape_cast %156 : vector<1x16x16xf32> to vector<16x16xf32>
    %158 = vector.broadcast %123 : f32 to vector<16x16xf32>
    %159 = arith.mulf %158, %157 : vector<16x16xf32>
    %c1_70 = arith.constant 1 : index
    %c0_71 = arith.constant 0 : index
    %c0_72 = arith.constant 0 : index
    %160 = vector.load %arg3[%c1_70, %c0_71, %c0_72] : memref<16x16x16xf32, #tpu.memory_space<vmem>>, vector<1x16x16xf32>
    %161 = vector.shape_cast %160 : vector<1x16x16xf32> to vector<16x16xf32>
    %162 = vector.broadcast %125 : f32 to vector<16x16xf32>
    %163 = arith.mulf %162, %161 : vector<16x16xf32>
    %164 = arith.addf %159, %163 : vector<16x16xf32>
    %c2_73 = arith.constant 2 : index
    %c0_74 = arith.constant 0 : index
    %c0_75 = arith.constant 0 : index
    %165 = vector.load %arg3[%c2_73, %c0_74, %c0_75] : memref<16x16x16xf32, #tpu.memory_space<vmem>>, vector<1x16x16xf32>
    %166 = vector.shape_cast %165 : vector<1x16x16xf32> to vector<16x16xf32>
    %167 = vector.broadcast %127 : f32 to vector<16x16xf32>
    %168 = arith.mulf %167, %166 : vector<16x16xf32>
    %169 = arith.addf %164, %168 : vector<16x16xf32>
    %c3_76 = arith.constant 3 : index
    %c0_77 = arith.constant 0 : index
    %c0_78 = arith.constant 0 : index
    %170 = vector.load %arg3[%c3_76, %c0_77, %c0_78] : memref<16x16x16xf32, #tpu.memory_space<vmem>>, vector<1x16x16xf32>
    %171 = vector.shape_cast %170 : vector<1x16x16xf32> to vector<16x16xf32>
    %172 = vector.broadcast %129 : f32 to vector<16x16xf32>
    %173 = arith.mulf %172, %171 : vector<16x16xf32>
    %174 = arith.addf %169, %173 : vector<16x16xf32>
    %c4_79 = arith.constant 4 : index
    %c0_80 = arith.constant 0 : index
    %c0_81 = arith.constant 0 : index
    %175 = vector.load %arg3[%c4_79, %c0_80, %c0_81] : memref<16x16x16xf32, #tpu.memory_space<vmem>>, vector<1x16x16xf32>
    %176 = vector.shape_cast %175 : vector<1x16x16xf32> to vector<16x16xf32>
    %177 = vector.broadcast %131 : f32 to vector<16x16xf32>
    %178 = arith.mulf %177, %176 : vector<16x16xf32>
    %179 = arith.addf %174, %178 : vector<16x16xf32>
    %c5_82 = arith.constant 5 : index
    %c0_83 = arith.constant 0 : index
    %c0_84 = arith.constant 0 : index
    %180 = vector.load %arg3[%c5_82, %c0_83, %c0_84] : memref<16x16x16xf32, #tpu.memory_space<vmem>>, vector<1x16x16xf32>
    %181 = vector.shape_cast %180 : vector<1x16x16xf32> to vector<16x16xf32>
    %182 = vector.broadcast %133 : f32 to vector<16x16xf32>
    %183 = arith.mulf %182, %181 : vector<16x16xf32>
    %184 = arith.addf %179, %183 : vector<16x16xf32>
    %c6_85 = arith.constant 6 : index
    %c0_86 = arith.constant 0 : index
    %c0_87 = arith.constant 0 : index
    %185 = vector.load %arg3[%c6_85, %c0_86, %c0_87] : memref<16x16x16xf32, #tpu.memory_space<vmem>>, vector<1x16x16xf32>
    %186 = vector.shape_cast %185 : vector<1x16x16xf32> to vector<16x16xf32>
    %187 = vector.broadcast %135 : f32 to vector<16x16xf32>
    %188 = arith.mulf %187, %186 : vector<16x16xf32>
    %189 = arith.addf %184, %188 : vector<16x16xf32>
    %c7_88 = arith.constant 7 : index
    %c0_89 = arith.constant 0 : index
    %c0_90 = arith.constant 0 : index
    %190 = vector.load %arg3[%c7_88, %c0_89, %c0_90] : memref<16x16x16xf32, #tpu.memory_space<vmem>>, vector<1x16x16xf32>
    %191 = vector.shape_cast %190 : vector<1x16x16xf32> to vector<16x16xf32>
    %192 = vector.broadcast %137 : f32 to vector<16x16xf32>
    %193 = arith.mulf %192, %191 : vector<16x16xf32>
    %194 = arith.addf %189, %193 : vector<16x16xf32>
    %c8_91 = arith.constant 8 : index
    %c0_92 = arith.constant 0 : index
    %c0_93 = arith.constant 0 : index
    %195 = vector.load %arg3[%c8_91, %c0_92, %c0_93] : memref<16x16x16xf32, #tpu.memory_space<vmem>>, vector<1x16x16xf32>
    %196 = vector.shape_cast %195 : vector<1x16x16xf32> to vector<16x16xf32>
    %197 = vector.broadcast %139 : f32 to vector<16x16xf32>
    %198 = arith.mulf %197, %196 : vector<16x16xf32>
    %199 = arith.addf %194, %198 : vector<16x16xf32>
    %c9_94 = arith.constant 9 : index
    %c0_95 = arith.constant 0 : index
    %c0_96 = arith.constant 0 : index
    %200 = vector.load %arg3[%c9_94, %c0_95, %c0_96] : memref<16x16x16xf32, #tpu.memory_space<vmem>>, vector<1x16x16xf32>
    %201 = vector.shape_cast %200 : vector<1x16x16xf32> to vector<16x16xf32>
    %202 = vector.broadcast %141 : f32 to vector<16x16xf32>
    %203 = arith.mulf %202, %201 : vector<16x16xf32>
    %204 = arith.addf %199, %203 : vector<16x16xf32>
    %c10_97 = arith.constant 10 : index
    %c0_98 = arith.constant 0 : index
    %c0_99 = arith.constant 0 : index
    %205 = vector.load %arg3[%c10_97, %c0_98, %c0_99] : memref<16x16x16xf32, #tpu.memory_space<vmem>>, vector<1x16x16xf32>
    %206 = vector.shape_cast %205 : vector<1x16x16xf32> to vector<16x16xf32>
    %207 = vector.broadcast %143 : f32 to vector<16x16xf32>
    %208 = arith.mulf %207, %206 : vector<16x16xf32>
    %209 = arith.addf %204, %208 : vector<16x16xf32>
    %c11_100 = arith.constant 11 : index
    %c0_101 = arith.constant 0 : index
    %c0_102 = arith.constant 0 : index
    %210 = vector.load %arg3[%c11_100, %c0_101, %c0_102] : memref<16x16x16xf32, #tpu.memory_space<vmem>>, vector<1x16x16xf32>
    %211 = vector.shape_cast %210 : vector<1x16x16xf32> to vector<16x16xf32>
    %212 = vector.broadcast %145 : f32 to vector<16x16xf32>
    %213 = arith.mulf %212, %211 : vector<16x16xf32>
    %214 = arith.addf %209, %213 : vector<16x16xf32>
    %c12_103 = arith.constant 12 : index
    %c0_104 = arith.constant 0 : index
    %c0_105 = arith.constant 0 : index
    %215 = vector.load %arg3[%c12_103, %c0_104, %c0_105] : memref<16x16x16xf32, #tpu.memory_space<vmem>>, vector<1x16x16xf32>
    %216 = vector.shape_cast %215 : vector<1x16x16xf32> to vector<16x16xf32>
    %217 = vector.broadcast %147 : f32 to vector<16x16xf32>
    %218 = arith.mulf %217, %216 : vector<16x16xf32>
    %219 = arith.addf %214, %218 : vector<16x16xf32>
    %c13_106 = arith.constant 13 : index
    %c0_107 = arith.constant 0 : index
    %c0_108 = arith.constant 0 : index
    %220 = vector.load %arg3[%c13_106, %c0_107, %c0_108] : memref<16x16x16xf32, #tpu.memory_space<vmem>>, vector<1x16x16xf32>
    %221 = vector.shape_cast %220 : vector<1x16x16xf32> to vector<16x16xf32>
    %222 = vector.broadcast %149 : f32 to vector<16x16xf32>
    %223 = arith.mulf %222, %221 : vector<16x16xf32>
    %224 = arith.addf %219, %223 : vector<16x16xf32>
    %c14_109 = arith.constant 14 : index
    %c0_110 = arith.constant 0 : index
    %c0_111 = arith.constant 0 : index
    %225 = vector.load %arg3[%c14_109, %c0_110, %c0_111] : memref<16x16x16xf32, #tpu.memory_space<vmem>>, vector<1x16x16xf32>
    %226 = vector.shape_cast %225 : vector<1x16x16xf32> to vector<16x16xf32>
    %227 = vector.broadcast %151 : f32 to vector<16x16xf32>
    %228 = arith.mulf %227, %226 : vector<16x16xf32>
    %229 = arith.addf %224, %228 : vector<16x16xf32>
    %c15_112 = arith.constant 15 : index
    %c0_113 = arith.constant 0 : index
    %c0_114 = arith.constant 0 : index
    %230 = vector.load %arg3[%c15_112, %c0_113, %c0_114] : memref<16x16x16xf32, #tpu.memory_space<vmem>>, vector<1x16x16xf32>
    %231 = vector.shape_cast %230 : vector<1x16x16xf32> to vector<16x16xf32>
    %232 = vector.broadcast %153 : f32 to vector<16x16xf32>
    %233 = arith.mulf %232, %231 : vector<16x16xf32>
    %234 = arith.addf %229, %233 : vector<16x16xf32>
    %235 = vector.broadcast %155 : f32 to vector<16x16xf32>
    %236 = arith.addf %234, %235 : vector<16x16xf32>
    %cst_115 = arith.constant 0.000000e+00 : f32
    %237 = vector.broadcast %cst_115 : f32 to vector<16x16xf32>
    %238 = arith.maximumf %236, %237 : vector<16x16xf32>
    %c16 = arith.constant 16 : index
    %c0_116 = arith.constant 0 : index
    %239 = vector.load %arg7[%c16, %c0_116] : memref<32x16xf32, #tpu.memory_space<vmem>>, vector<16x16xf32>
    tpu.vector_store %arg7[%c16, %c0_116], %238 {strides = array<i32>} : memref<32x16xf32, #tpu.memory_space<vmem>>, vector<16x16xf32>,
    %c0_117 = arith.constant 0 : index
    %c0_118 = arith.constant 0 : index
    %240 = vector.load %arg7[%c0_117, %c0_118] : memref<32x16xf32, #tpu.memory_space<vmem>>, vector<32x16xf32>
    %c0_119 = arith.constant 0 : index
    %c0_120 = arith.constant 0 : index
    %241 = vector.load %arg4[%c0_119, %c0_120] : memref<16x1000xf32, #tpu.memory_space<vmem>>, vector<16x1000xf32>
    %cst_121 = arith.constant dense<0.000000e+00> : vector<32x1000xf32>
    %242 = tpu.matmul %240, %241, %cst_121 {dimension_numbers = #tpu.dot_dimension_numbers<[1], [0], [0], [1], [0, 0, 1, 1], [], []>} : vector<32x16xf32>, vector<16x1000xf32>, vector<32x1000xf32> -> vector<32x1000xf32>
    %c0_122 = arith.constant 0 : index
    %c0_123 = arith.constant 0 : index
    %243 = vector.load %arg5[%c0_122, %c0_123] : memref<1x1000xf32, #tpu.memory_space<vmem>>, vector<1x1000xf32>
    %244 = vector.broadcast %243 : vector<1x1000xf32> to vector<32x1000xf32>
    %245 = arith.addf %242, %244 : vector<32x1000xf32>
    %c0_124 = arith.constant 0 : index
    %c0_125 = arith.constant 0 : index
    %246 = vector.load %arg6[%c0_124, %c0_125] : memref<32x1000xf32, #tpu.memory_space<vmem>>, vector<32x1000xf32>
    tpu.vector_store %arg6[%c0_124, %c0_125], %245 {strides = array<i32>} : memref<32x1000xf32, #tpu.memory_space<vmem>>, vector<32x1000xf32>,
    return
  }
  func.func @transform_0(%arg0: i32) -> (i32, i32) {
    %c0_i32 = arith.constant 0 : i32
    %c0_i32_0 = arith.constant 0 : i32
    %c0_i32_1 = arith.constant 0 : i32
    return %c0_i32, %c0_i32_0 : i32, i32
  }
  func.func @transform_1(%arg0: i32) -> i32 {
    %c0_i32 = arith.constant 0 : i32
    %c0_i32_0 = arith.constant 0 : i32
    return %c0_i32 : i32
  }
  func.func @transform_2(%arg0: i32) -> (i32, i32, i32) {
    %c0_i32 = arith.constant 0 : i32
    %c0_i32_0 = arith.constant 0 : i32
    %c0_i32_1 = arith.constant 0 : i32
    %c0_i32_2 = arith.constant 0 : i32
    return %c0_i32, %c0_i32_0, %c0_i32_1 : i32, i32, i32
  }
  func.func @transform_3(%arg0: i32) -> (i32, i32) {
    %c0_i32 = arith.constant 0 : i32
    %c0_i32_0 = arith.constant 0 : i32
    %c0_i32_1 = arith.constant 0 : i32
    return %c0_i32, %c0_i32_0 : i32, i32
  }
  func.func @transform_4(%arg0: i32) -> (i32, i32) {
    %c0_i32 = arith.constant 0 : i32
    %c0_i32_0 = arith.constant 0 : i32
    %c0_i32_1 = arith.constant 0 : i32
    return %c0_i32, %c0_i32_0 : i32, i32
  }
  func.func @transform_5(%arg0: i32) -> (i32, i32) {
    %c0_i32 = arith.constant 0 : i32
    %c0_i32_0 = arith.constant 0 : i32
    return %arg0, %c0_i32 : i32, i32
  }
}

</mosaic_0001>

<bundles_post_ra>
// kernel: model_forward.1
= control target key start
LH: loop header
LB: loop body
LE: loop exit
PB: predicated region body
PF: predicated region fallthrough
CT: control target
= control target key end

     0   :  { %10 = vsyncpa [#allocation5], 0  ;;  %s1838_s0 = inlined_call_operand.hbm [shape: f32[16,16], index: 0, kind: input, shape index: {}]   ;;  %s1839_s1 = inlined_call_operand.vmem [shape: f32[16], index: 1, kind: input, shape index: {}]   ;;  %s1840_s2 = inlined_call_operand.hbm [shape: f32[16,16,16], index: 2, kind: input, shape index: {}]   ;;  %s1841_s3 = inlined_call_operand.hbm [shape: f32[16,1000], index: 3, kind: input, shape index: {}]   ;;  %s1842_s4 = inlined_call_operand.vmem [shape: f32[1,1000], index: 4, kind: input, shape index: {}]   ;;  %s1843_s5 = inlined_call_operand.vmem [shape: f32[256,1000], index: 5, kind: output, shape index: {}]  }
   0x1   :  { %11 = vsyncpa [#allocation6], 0 }
   0x2   :  { %12 = vsyncpa [#allocation4], 0 }
   0x3   :  { %13 = vsyncpa [#allocation10], 0  ;;  %s1374_s18 = smov 0  }
   0x4 LB: > { %s1380_s19 = sadd.s32 4294967295, %s1333_s18   ;;  %p1140_p0 = scmp.ge.s32.totalorder %s1333_s18, 1  ;;  %s1333_s18 = sphi %s1374_s18, %s19_s18  }
   0x5   : > { %p155_p1 = scmp.lt.s32.totalorder %s1333_s18, 9  ;;  %p1208_p2 = scmp.eq.s32.totalorder %s1380_s19, 0 }
   0x6   : > { %s179_s23 = sshll.u32 %s1839_s1, 4  ;;  %s1335_s24 = smov [#allocation8]   ;;  %s180_s23 = int_to_ptr.vmem [resolvable:$true] %s179_s23 }
   0x7   : > { %p1385_p3 = pnand %p1140_p0, %p155_p1  ;;  %s189_s25 = sshll.u32 %s1335_s24, 4  ;;  %s1400_s25 = int_to_ptr.vmem [resolvable:$true] %s189_s25 }
   0x8   : > { %s1336_s27 = smov [#allocation9]   ;;  %s1337_s29 = smov [#allocation3]  }
   0x9   : > { %p1195_p4 = pneg %p1385_p3  ;;  %s202_s28 = sshll.u32 %s1336_s27, 4  ;;  %s1402_s28 = int_to_ptr.vmem [resolvable:$true] %s202_s28 }
   0xa   : > { %s1338_s30 = smov 128   ;;  %s1339_s6 = smov 8  }
   0xb   : > { %p1396_p5 = pnand %p1208_p2, %p1195_p4  ;;  %s1244_s9 = scalar_lea.vmem %s180_s23, 16 }
   0xc   : > { %p1245_p6 = scmp.ne.s32.totalorder %s180_s23, %s1244_s9  ;;  %p1252_p10 = scmp.lt.s32.totalorder %s180_s23, %s180_s23 }
   0xd   : > { %1198 = dma.hbm_to_smem (!%p1396_p5), %s1838_s0, 256, %s1337_s29, [#allocation5], %s1338_s30, %s1338_s30, %s1339_s6  }
   0xe   : > { %p1246_p7 = pneg %p1396_p5  ;;  %p1253_p11 = scmp.lt.s32.totalorder %s1244_s9, %s1244_s9 }
  0x10   : > { %p1247_p8 = pnand %p1246_p7, %p1245_p6  ;;  %p1254_p12 = por %p1253_p11, %p1252_p10 }
  0x12   : > { %p1248_p9 = pneg %p1247_p8 }
  0x14   : > { %p1255_p13 = pnand %p1254_p12, %p1248_p9 }
  0x16   : > { %1258 = shalt.err (!%p1255_p13)
}
  0x17   : > { %s1340_s10 = smov [#allocation7]   ;;  %s1270_s11 = scalar_lea.vmem %s1400_s25, 4096 }
  0x18   : > { %1201 = dma.vmem_to_smem (!%p1396_p5), %s180_s23, 16, %s1340_s10, [#allocation6]  }
  0x19   : > { %p1271_p0 = scmp.ne.s32.totalorder %s1400_s25, %s1270_s11  ;;  %p1278_p6 = scmp.lt.s32.totalorder %s1400_s25, %s1400_s25 }
  0x1a   : > { %p1279_p8 = scmp.lt.s32.totalorder %s1270_s11, %s1270_s11 }
  0x1b   : > { %p1273_p1 = pnand %p1271_p0, %p1246_p7 }
  0x1c   : > { %p1280_p10 = por %p1279_p8, %p1278_p6 }
  0x1d   : > { %p1274_p4 = pneg %p1273_p1 }
  0x1f   : > { %p1281_p9 = pnand %p1280_p10, %p1274_p4 }
  0x21   : > { %1284 = shalt.err (!%p1281_p9)
}
  0x22   : > { %1204 = dma.hbm_to_vmem [thread:$0]  (!%p1396_p5), %s1840_s2, 4096, %s1400_s25, [#allocation4], %s1338_s30, %s1338_s30, %s1339_s6  }
  0x23   : > { %s1296_s14 = scalar_lea.vmem %s1402_s28, 2048  ;;  %p1304_p0 = scmp.lt.s32.totalorder %s1402_s28, %s1402_s28 }
  0x24   : > { %p1297_p11 = scmp.ne.s32.totalorder %s1402_s28, %s1296_s14  ;;  %p1305_p1 = scmp.lt.s32.totalorder %s1296_s14, %s1296_s14 }
  0x26   : > { %p1299_p12 = pnand %p1297_p11, %p1246_p7  ;;  %p1306_p4 = por %p1305_p1, %p1304_p0 }
  0x28   : > { %p1300_p13 = pneg %p1299_p12 }
  0x2a   : > { %p1307_p6 = pnand %p1306_p4, %p1300_p13 }
  0x2c   : > { %1310 = shalt.err (!%p1307_p6)
}
  0x2d   : > { %s1341_s15 = smov 1024   ;;  %s1342_s16 = smov 64  }
  0x2e   : > { %1207 = dma.hbm_to_vmem [thread:$0]  (!%p1396_p5), %s1841_s3, 2048, %s1402_s28, [#allocation10], %s1341_s15, %s1341_s15, %s1342_s16  }
  0x2f   : > { %221 = sbr.rel (%p1385_p3) target bundleno = 349 (0x15d), region = 40 }
  0x34   : > { %1316 = dma.done.wait (%p1208_p2), [#allocation5], 256  }
  0x35   : > { %1318 = vsyncadd (%p1208_p2), [#allocation5], 4294967040 }
  0x36   : > { %1320 = dma.done.wait (%p1208_p2), [#allocation6], 16  }
  0x37   : > { %1322 = vsyncadd (%p1208_p2), [#allocation6], 4294967280 }
  0x38   : > { %1324 = dma.done.wait (%p1208_p2), [#allocation4], 4096  }
  0x39   : > { %1326 = vsyncadd (%p1208_p2), [#allocation4], 4294963200 }
  0x3a   : > { %1328 = dma.done.wait (%p1208_p2), [#allocation10], 2048  }
  0x3b   : > { %1330 = vsyncadd (%p1208_p2), [#allocation10], 4294965248 }
  0x3c   : > { %239 = sfence }
  0x3d   : > { %v596_v0 = vld [vmem:[#allocation9 + $0x48] sm:$0xff]  ;;  %v598_v1 = vld [vmem:[#allocation9 + $0x58] sm:$0xff]  ;;  %v595_v2 = vld [vmem:[#allocation9 + $0x40] sm:$0xff]  ;;  %s1461_s20 = sshll.u32 %s1380_s19, 8  ;;  %v1343_v10 = vmov 0.0   ;;  %vm429_vm0 = vcmask 130048  }
  0x3e   : > { %685 = vmatprep.subr.mxu0 %v596_v0  ;;  %774 = vmatprep.subr.mxu1 %v598_v1  ;;  %v597_v3 = vld [vmem:[#allocation9 + $0x50] sm:$0xff]  ;;  %v588_v4 = vld [vmem:[#allocation9 + $0x8] sm:$0xff]  ;;  %v590_v5 = vld [vmem:[#allocation9 + $0x18] sm:$0xff]  ;;  %s1464_s22 = sld [smem:[#allocation3 + %s1461_s20]]  ;;  %s268_s23 = sadd.s32 1, %s1461_s20  ;;  %vm1020_vm1 = vcmask 850944  }
  0x3f   : > { %686 = vmatpush1.msra.mxu0 %v595_v2  ;;  %775 = vmatpush1.msra.mxu1 %v597_v3  ;;  %v587_v6 = vld [vmem:[#allocation9] sm:$0xff]  ;;  %v589_v7 = vld [vmem:[#allocation9 + $0x10] sm:$0xff]  ;;  %s1467_s24 = sld [smem:[#allocation3 + %s268_s23]]  ;;  %s270_s25 = sadd.s32 2, %s1461_s20  ;;  %v600_v8 = vld [vmem:[#allocation9 + $0x68] sm:$0xff] }
  0x40   : > { %687 = vmatprep.subr.mxu0 %v588_v4  ;;  %776 = vmatprep.subr.mxu1 %v590_v5  ;;  %v602_v9 = vld [vmem:[#allocation9 + $0x78] sm:$0xff]  ;;  %s1470_s26 = sld [smem:[#allocation3 + %s270_s25]]  ;;  %s272_s27 = sadd.s32 3, %s1461_s20  ;;  %v1481_v11 = vld [vmem:[#allocation8] sm:$0xff]  ;;  %v1486_v12 = vld [vmem:[#allocation8 + $0x10] sm:$0xff] }
  0x41   : > { %688 = vmatpush1.msra.mxu0 %v587_v6  ;;  %777 = vmatpush1.msra.mxu1 %v589_v7  ;;  %s1473_s28 = sld [smem:[#allocation3 + %s272_s27]]  ;;  %s274_s29 = sadd.s32 4, %s1461_s20  ;;  %v1492_v14 = vld [vmem:[#allocation8 + $0x20] sm:$0xff]  ;;  %v1499_v17 = vld [vmem:[#allocation8 + $0x30] sm:$0xff]  ;;  %v1506_v20 = vld [vmem:[#allocation8 + $0x8] sm:$0xff] }
  0x42   : > { %721 = vmatprep.mubr.f32.mxu0 %v1343_v10  ;;  %810 = vmatprep.mubr.f32.mxu1 %v1343_v10  ;;  %s1478_s30 = sld [smem:[#allocation3 + %s274_s29]]  ;;  %s276_s6 = sadd.s32 5, %s1461_s20  ;;  %v1508_v21 = vld [vmem:[#allocation8 + $0x18] sm:$0xff]  ;;  %v1515_v24 = vld [vmem:[#allocation8 + $0x40] sm:$0xff]  ;;  %v1519_v27 = vld [vmem:[#allocation8 + $0x28] sm:$0xff] }
  0x43   : > { %863 = vmatprep.subr.mxu0 %v600_v8  ;;  %952 = vmatprep.subr.mxu1 %v602_v9  ;;  %s1483_s7 = sld [smem:[#allocation3 + %s276_s6]]  ;;  %s278_s8 = sadd.s32 6, %s1461_s20  ;;  %v1521_v28 = vld [vmem:[#allocation8 + $0x38] sm:$0xff]  ;;  %v1529_v33 = vld [vmem:[#allocation8 + $0x48] sm:$0xff]  ;;  %v1534_v34 = vld [vmem:[#allocation8 + $0x50] sm:$0xff] }
  0x44   : > { %s1488_s9 = sld [smem:[#allocation3 + %s278_s8]]  ;;  %s280_s10 = sadd.s32 7, %s1461_s20  ;;  %v301_v13 = vstv %s1464_s22  ;;  %v1542_v40 = vld [vmem:[#allocation8 + $0x58] sm:$0xff]  ;;  %v1547_v41 = vld [vmem:[#allocation8 + $0x60] sm:$0xff]  ;;  %v1553_v47 = vld [vmem:[#allocation8 + $0x68] sm:$0xff] }
  0x45   : > { %s1494_s11 = sld [smem:[#allocation3 + %s280_s10]]  ;;  %s282_s12 = sadd.s32 8, %s1461_s20  ;;  %v302_v15 = vmul.f32 %v301_v13, %v1481_v11  ;;  %v307_v16 = vstv %s1467_s24  ;;  %v303_v25 = vmul.f32 %v301_v13, %v1506_v20  ;;  %v1557_v48 = vld [vmem:[#allocation8 + $0x70] sm:$0xff]  ;;  %v1564_v54 = vld [vmem:[#allocation8 + $0x78] sm:$0xff]  ;;  %v1569_v55 = vld [vmem:[#allocation8 + $0x80] sm:$0xff] }
  0x46   : > { %s1501_s13 = sld [smem:[#allocation3 + %s282_s12]]  ;;  %s284_s14 = sadd.s32 9, %s1461_s20  ;;  %v308_v18 = vmul.f32 %v307_v16, %v1486_v12  ;;  %v315_v19 = vstv %s1470_s26  ;;  %v309_v26 = vmul.f32 %v307_v16, %v1508_v21  ;;  %v1572_v57 = vld [vmem:[#allocation8 + $0x90] sm:$0xff]  ;;  %v1581_v63 = vld [vmem:[#allocation8 + $0xa0] sm:$0xff]  ;;  %v1584_v1 = vld [vmem:[#allocation8 + $0x88] sm:$0xff] }
  0x47   : > { %s1510_s15 = sld [smem:[#allocation3 + %s284_s14]]  ;;  %s286_s16 = sadd.s32 10, %s1461_s20  ;;  %v316_v22 = vmul.f32 %v315_v19, %v1492_v14  ;;  %v323_v23 = vstv %s1473_s28  ;;  %v317_v32 = vmul.f32 %v315_v19, %v1519_v27  ;;  %v1586_v2 = vld [vmem:[#allocation8 + $0x98] sm:$0xff]  ;;  %v1591_v3 = vld [vmem:[#allocation8 + $0xb0] sm:$0xff]  ;;  %v1594_v5 = vld [vmem:[#allocation8 + $0xc0] sm:$0xff] }
  0x48   : > { %s1523_s17 = sld [smem:[#allocation3 + %s286_s16]]  ;;  %s288_s21 = sadd.s32 11, %s1461_s20  ;;  %v310_v29 = vadd.f32 %v308_v18, %v302_v15  ;;  %v324_v30 = vmul.f32 %v323_v23, %v1499_v17  ;;  %v331_v31 = vstv %s1478_s30  ;;  %v311_v36 = vadd.f32 %v309_v26, %v303_v25  ;;  %v1598_v9 = vld [vmem:[#allocation8 + $0xa8] sm:$0xff]  ;;  %v1605_v18 = vld [vmem:[#allocation8 + $0xd0] sm:$0xff] }
  0x49   : > { %s1531_s22 = sld [smem:[#allocation3 + %s288_s21]]  ;;  %s290_s23 = sadd.s32 12, %s1461_s20  ;;  %v339_v35 = vstv %s1483_s7  ;;  %v325_v37 = vmul.f32 %v323_v23, %v1521_v28  ;;  %v332_v39 = vmul.f32 %v331_v31, %v1515_v24  ;;  %v333_v44 = vmul.f32 %v331_v31, %v1529_v33 }
  0x4a   : > { %s1538_s24 = sld [smem:[#allocation3 + %s290_s23]]  ;;  %s292_s25 = sadd.s32 13, %s1461_s20  ;;  %v318_v38 = vadd.f32 %v316_v22, %v310_v29  ;;  %v347_v42 = vstv %s1488_s9  ;;  %v319_v43 = vadd.f32 %v317_v32, %v311_v36  ;;  %v340_v46 = vmul.f32 %v339_v35, %v1534_v34  ;;  %v1608_v22 = vld [vmem:[#allocation8 + $0xb8] sm:$0xff] }
  0x4b   : > { %s1544_s26 = sld [smem:[#allocation3 + %s292_s25]]  ;;  %s294_s27 = sadd.s32 14, %s1461_s20  ;;  %v355_v49 = vstv %s1494_s11  ;;  %v341_v51 = vmul.f32 %v339_v35, %v1542_v40  ;;  %v348_v53 = vmul.f32 %v347_v42, %v1547_v41  ;;  %v349_v60 = vmul.f32 %v347_v42, %v1553_v47 }
  0x4c   : > { %s296_s28 = sadd.s32 15, %s1461_s20  ;;  %v326_v45 = vadd.f32 %v324_v30, %v318_v38  ;;  %s1555_s29 = sld [smem:[#allocation3 + %s294_s27]]  ;;  %v327_v50 = vadd.f32 %v325_v37, %v319_v43  ;;  %v363_v56 = vstv %s1501_s13  ;;  %v356_v62 = vmul.f32 %v355_v49, %v1557_v48 }
  0x4d   : > { %s1561_s30 = sld [smem:[#allocation3 + %s296_s28]]  ;;  %s1567_s6 = sadd.s32 128, %s1461_s20  ;;  %v371_v58 = vstv %s1510_s15  ;;  %v357_v8 = vmul.f32 %v355_v49, %v1564_v54  ;;  %v364_v15 = vmul.f32 %v363_v56, %v1569_v55  ;;  %v365_v26 = vmul.f32 %v363_v56, %v1584_v1 }
  0x4e   : > { %v334_v52 = vadd.f32 %v332_v39, %v326_v45  ;;  %v335_v59 = vadd.f32 %v333_v44, %v327_v50  ;;  %s1577_s7 = sld [smem:[#allocation3 + %s1567_s6]]  ;;  %s435_s8 = sadd.s32 1, %s1567_s6  ;;  %v379_v0 = vstv %s1523_s17  ;;  %v372_v16 = vmul.f32 %v371_v58, %v1572_v57 }
  0x4f   : > { %s1588_s20 = sld [smem:[#allocation3 + %s435_s8]]  ;;  %s437_s9 = sadd.s32 2, %s1567_s6  ;;  %v387_v4 = vstv %s1531_s22  ;;  %v380_v23 = vmul.f32 %v379_v0, %v1581_v63  ;;  %v373_v29 = vmul.f32 %v371_v58, %v1586_v2  ;;  %v381_v35 = vmul.f32 %v379_v0, %v1598_v9 }
  0x50   : > { %v342_v61 = vadd.f32 %v340_v46, %v334_v52  ;;  %v395_v6 = vstv %s1538_s24  ;;  %v343_v7 = vadd.f32 %v341_v51, %v335_v59  ;;  %s1600_s10 = sld [smem:[#allocation3 + %s437_s9]]  ;;  %s439_s11 = sadd.s32 3, %s1567_s6  ;;  %v388_v31 = vmul.f32 %v387_v4, %v1591_v3 }
  0x51   : > { %v403_v19 = vstv %s1544_s26  ;;  %s1610_s12 = sld [smem:[#allocation3 + %s439_s11]]  ;;  %s441_s13 = sadd.s32 4, %s1567_s6  ;;  %v396_v32 = vmul.f32 %v395_v6, %v1594_v5  ;;  %v389_v38 = vmul.f32 %v387_v4, %v1608_v22 }
  0x52   : > { %v350_v13 = vadd.f32 %v348_v53, %v342_v61  ;;  %v351_v25 = vadd.f32 %v349_v60, %v343_v7  ;;  %s1616_s14 = sld [smem:[#allocation3 + %s441_s13]]  ;;  %s443_s15 = sadd.s32 5, %s1567_s6  ;;  %v1630_v36 = vmul.f32 %v403_v19, %v1605_v18  ;;  %v1648_v53 = vld [vmem:[#allocation8 + $0xc8] sm:$0xff]  ;;  %v411_v61 = vstv %s1555_s29 }
  0x53   : > { %s1624_s16 = sld [smem:[#allocation3 + %s443_s15]]  ;;  %s445_s17 = sadd.s32 6, %s1567_s6 }
  0x54   : > { %v358_v30 = vadd.f32 %v356_v62, %v350_v13  ;;  %v359_v37 = vadd.f32 %v357_v8, %v351_v25  ;;  %s1633_s21 = sld [smem:[#allocation3 + %s445_s17]]  ;;  %s447_s22 = sadd.s32 7, %s1567_s6  ;;  %v468_v39 = vstv %s1577_s7  ;;  %v1659_v62 = vld [vmem:[#allocation8 + $0xd8] sm:$0xff] }
  0x55   : > { %s1637_s23 = sld [smem:[#allocation3 + %s447_s22]]  ;;  %s449_s25 = sadd.s32 8, %s1567_s6  ;;  %v469_v43 = vmul.f32 %v468_v39, %v1481_v11  ;;  %v473_v44 = vstv %s1588_s20  ;;  %v470_v45 = vmul.f32 %v468_v39, %v1506_v20 }
  0x56   : > { %v366_v42 = vadd.f32 %v364_v15, %v358_v30  ;;  %v367_v46 = vadd.f32 %v365_v26, %v359_v37  ;;  %s451_s27 = sadd.s32 9, %s1567_s6  ;;  %v474_v49 = vmul.f32 %v473_v44, %v1486_v12  ;;  %v480_v50 = vstv %s1600_s10  ;;  %s1153_s28 = sshll.u32 %s1380_s19, 1  ;;  %v1681_v26 = vld [vmem:[#allocation8 + $0xf0] sm:$0xff]  ;;  %v1689_v37 = vld [vmem:[#allocation8 + $0xf8] sm:$0xff] }
  0x57   : > { %v475_v51 = vmul.f32 %v473_v44, %v1508_v21  ;;  %s1650_s7 = sld [smem:[#allocation3 + %s449_s25]]  ;;  %v481_v11 = vmul.f32 %v480_v50, %v1492_v14  ;;  %v487_v20 = vstv %s1610_s12  ;;  %v482_v56 = vmul.f32 %v480_v50, %v1519_v27  ;;  %s453_s8 = sadd.s32 10, %s1567_s6  ;;  %v1668_v27 = vld [vmem:[#allocation8 + $0xe0] sm:$0xff] }
  0x58   : > { %v374_v52 = vadd.f32 %v372_v16, %v366_v42  ;;  %v375_v12 = vadd.f32 %v373_v29, %v367_v46  ;;  %v476_v58 = vadd.f32 %v474_v49, %v469_v43  ;;  %v488_v21 = vmul.f32 %v487_v20, %v1499_v17  ;;  %s1661_s20 = sld [smem:[#allocation3 + %s451_s27]]  ;;  %s455_s10 = sadd.s32 11, %s1567_s6  ;;  %v1676_v16 = vld [vmem:[#allocation8 + $0xe8] sm:$0xff] }
  0x59   : > { %v494_v59 = vstv %s1616_s14  ;;  %v501_v14 = vstv %s1624_s16  ;;  %v477_v0 = vadd.f32 %v475_v51, %v470_v45  ;;  %s1666_s9 = sld [smem:[#allocation7 + %s1153_s28]]  ;;  %v397_v17 = vmul.f32 %v395_v6, %v1648_v53  ;;  %s457_s24 = sadd.s32 12, %s1567_s6 }
  0x5a   : > { %v382_v60 = vadd.f32 %v380_v23, %v374_v52  ;;  %v383_v4 = vadd.f32 %v381_v35, %v375_v12  ;;  %v483_v7 = vadd.f32 %v481_v11, %v476_v58  ;;  %v495_v8 = vmul.f32 %v494_v59, %v1515_v24  ;;  %s1678_s29 = sld [smem:[#allocation3 + %s453_s8]]  ;;  %s459_s26 = sadd.s32 13, %s1567_s6 }
  0x5b   : > { %v419_v15 = vstv %s1561_s30  ;;  %v508_v23 = vstv %s1633_s21  ;;  %v484_v25 = vadd.f32 %v482_v56, %v477_v0  ;;  %v405_v6 = vmul.f32 %v403_v19, %v1659_v62  ;;  %s1691_s30 = sld [smem:[#allocation3 + %s455_s10]]  ;;  %s461_s12 = sadd.s32 14, %s1567_s6 }
  0x5c   : > { %v390_v13 = vadd.f32 %v388_v31, %v382_v60  ;;  %v391_v29 = vadd.f32 %v389_v38, %v383_v4  ;;  %v490_v30 = vadd.f32 %v488_v21, %v483_v7  ;;  %v502_v24 = vmul.f32 %v501_v14, %v1534_v34  ;;  %s1700_s11 = sld [smem:[#allocation3 + %s457_s24]]  ;;  %s463_s14 = sadd.s32 15, %s1567_s6 }
  0x5d   : > { %v412_v35 = vmul.f32 %v411_v61, %v1668_v27  ;;  %v515_v39 = vstv %s1637_s23  ;;  %v489_v42 = vmul.f32 %v487_v20, %v1521_v28  ;;  %v413_v43 = vmul.f32 %v411_v61, %v1676_v16  ;;  %s1706_s13 = sld [smem:[#allocation3 + %s459_s26]]  ;;  %s432_s6 = sadd.s32 1, %s1153_s28 }
  0x5e   : > { %v398_v31 = vadd.f32 %v396_v32, %v390_v13  ;;  %v399_v38 = vadd.f32 %v397_v17, %v391_v29  ;;  %v497_v19 = vadd.f32 %v495_v8, %v490_v30  ;;  %v509_v34 = vmul.f32 %v508_v23, %v1547_v41  ;;  %s1713_s15 = sld [smem:[#allocation3 + %s461_s12]]  ;;  %s1150_s21 = sshll.u32 %s1380_s19, 2 }
  0x5f   : > { %v420_v44 = vmul.f32 %v419_v15, %v1681_v26  ;;  %v522_v45 = vstv %s1650_s7  ;;  %v491_v46 = vadd.f32 %v489_v42, %v484_v25  ;;  %v421_v28 = vmul.f32 %v419_v15, %v1689_v37  ;;  %s1717_s16 = sld [smem:[#allocation3 + %s463_s14]]  ;;  %p259_p2 = scmp.lt.s32.totalorder %s1150_s21, 31 }
  0x60   : > { %v406_v32 = vadd.f32 %v1630_v36, %v398_v31  ;;  %v407_v49 = vadd.f32 %v405_v6, %v399_v38  ;;  %v504_v50 = vadd.f32 %v502_v24, %v497_v19  ;;  %v516_v51 = vmul.f32 %v515_v39, %v1557_v48  ;;  %s1733_s17 = sld [smem:[#allocation7 + %s432_s6]]  ;;  %v599_v19 = vld [vmem:[#allocation9 + $0x60] sm:$0xff] }
  0x61   : > { %v529_v41 = vstv %s1661_s20  ;;  %v496_v36 = vmul.f32 %v494_v59, %v1529_v33  ;;  %v424_v11 = vstv %s1666_s9  ;;  %v523_v12 = vmul.f32 %v522_v45, %v1569_v55  ;;  %s1847_s21 = smov (!%p259_p2, %s1150_s21), 31 }
  0x62   : > { %v414_v52 = vadd.f32 %v412_v35, %v406_v32  ;;  %v415_v20 = vadd.f32 %v413_v43, %v407_v49  ;;  %v511_v56 = vadd.f32 %v509_v34, %v504_v50  ;;  %v536_v21 = vstv %s1678_s29  ;;  %v601_v34 = vld [vmem:[#allocation9 + $0x70] sm:$0xff]  ;;  %s1174_s25 = sshll.u32 %s1847_s21, 6 }
  0x63   : > { %v498_v60 = vadd.f32 %v496_v36, %v491_v46  ;;  %v530_v0 = vmul.f32 %v529_v41, %v1572_v57  ;;  %v543_v33 = vstv %s1691_s30  ;;  %v503_v59 = vmul.f32 %v501_v14, %v1542_v40  ;;  %v594_v46 = vld [vmem:[#allocation9 + $0x38] sm:$0xff]  ;;  %s1793_s28 = scalar_lea.vmem %s1843_s5, %s1174_s25 }
  0x64   : > { %v422_v58 = vadd.f32 %v420_v44, %v414_v52  ;;  %v423_v48 = vadd.f32 %v421_v28, %v415_v20  ;;  %v518_v61 = vadd.f32 %v516_v51, %v511_v56  ;;  %v510_v55 = vmul.f32 %v508_v23, %v1553_v47  ;;  %v591_v52 = vld [vmem:[#allocation9 + $0x20] sm:$0xff] }
  0x65   : > { %v537_v8 = vmul.f32 %v536_v21, %v1581_v63  ;;  %v550_v15 = vstv %s1700_s11  ;;  %v505_v25 = vadd.f32 %v503_v59, %v498_v60  ;;  %v517_v57 = vmul.f32 %v515_v39, %v1564_v54 }
  0x66   : > { %v425_v4 = vadd.f32 %v424_v11, %v422_v58  ;;  %v426_v17 = vadd.f32 %v424_v11, %v423_v48  ;;  %v525_v7 = vadd.f32 %v523_v12, %v518_v61  ;;  %v544_v40 = vmul.f32 %v543_v33, %v1591_v3 }
  0x67   : > { %v557_v47 = vstv %s1706_s13  ;;  %v512_v14 = vadd.f32 %v510_v55, %v505_v25  ;;  %v524_v23 = vmul.f32 %v522_v45, %v1584_v1  ;;  %v551_v30 = vmul.f32 %v550_v15, %v1594_v5 }
  0x68   : > { %v427_v13 = vmax.f32 %v425_v4, 0.0  ;;  %v428_v29 = vmax.f32 %v426_v17, 0.0  ;;  %v532_v6 = vadd.f32 %v530_v0, %v525_v7  ;;  %v564_v54 = vstv %s1713_s15 }
  0x69   : > { %v519_v24 = vadd.f32 %v517_v57, %v512_v14  ;;  %v531_v31 = vmul.f32 %v529_v41, %v1586_v2  ;;  %v558_v3 = vmul.f32 %v557_v47, %v1605_v18  ;;  %v571_v39 = vstv %s1717_s16  ;;  %v592_v18 = vld [vmem:[#allocation9 + $0x28] sm:$0xff]  ;;  %v593_v41 = vld [vmem:[#allocation9 + $0x30] sm:$0xff] }
  0x6a   : > { %430 = vst.msk [vmem:[#allocation2] sm:$0xff] %vm429_vm0, %v427_v13  ;;  %431 = vst.msk [vmem:[#allocation2 + $0x8] sm:$0xff] %vm429_vm0, %v428_v29  ;;  %v539_v63 = vadd.f32 %v537_v8, %v532_v6  ;;  %v538_v38 = vmul.f32 %v536_v21, %v1598_v9  ;;  %v565_v1 = vmul.f32 %v564_v54, %v1668_v27 }
  0x6b   : > { %v526_v42 = vadd.f32 %v524_v23, %v519_v24  ;;  %v545_v5 = vmul.f32 %v543_v33, %v1608_v22  ;;  %v572_v2 = vmul.f32 %v571_v39, %v1681_v26  ;;  %v552_v49 = vmul.f32 %v550_v15, %v1648_v53  ;;  %v603_v33 = vld [vmem:[%s1842_s4] sm:$0xff] }
  0x6c   : > { %v546_v35 = vadd.f32 %v544_v40, %v539_v63  ;;  %v576_v22 = vstv %s1733_s17  ;;  %v559_v26 = vmul.f32 %v557_v47, %v1659_v62  ;;  %v566_v36 = vmul.f32 %v564_v54, %v1676_v16 }
  0x6d   : > { %v533_v32 = vadd.f32 %v531_v31, %v526_v42  ;;  %v573_v20 = vmul.f32 %v571_v39, %v1689_v37  ;;  %v605_v37 = vlaneseq }
  0x6e   : > { %v553_v43 = vadd.f32 %v551_v30, %v546_v35 }
  0x6f   : > { %v540_v9 = vadd.f32 %v538_v38, %v533_v32  ;;  %v1781_v61 = vshrl.u32 %v605_v37, 7 }
  0x70   : > { %v560_v45 = vadd.f32 %v558_v3, %v553_v43 }
  0x71   : > { %v583_v44 = vld [vmem:[#allocation2] sm:$0xff]  ;;  %v584_v27 = vld [vmem:[#allocation2 + $0x8] sm:$0xff]  ;;  %v547_v50 = vadd.f32 %v545_v5, %v540_v9  ;;  %v607_v0 = vsub.s32 0, %v1781_v61  ;;  %v615_v4 = vsub.s32 2, %v1781_v61  ;;  %v619_v59 = vsub.s32 3, %v1781_v61 }
  0x72   : > { %1156 = vmatmul.mubr.msk.f32.vlgmr.msra.gmra.mxu0 %vm429_vm0, %v583_v44  ;;  %1160 = vmatmul.mubr.msk.f32.vlgmr.msra.gmra.mxu1 %vm429_vm0, %v583_v44  ;;  %v567_v28 = vadd.f32 %v565_v1, %v560_v45  ;;  %v623_v32 = vsub.s32 4, %v1781_v61  ;;  %v631_v5 = vsub.s32 6, %v1781_v61  ;;  %v635_v45 = vsub.s32 7, %v1781_v61 }
  0x73   : > { %864 = vmatpush1.msra.mxu0 %v599_v19  ;;  %953 = vmatpush1.msra.mxu1 %v601_v34  ;;  %v554_v53 = vadd.f32 %v552_v49, %v547_v50  ;;  %v608_v55 = vrot.slane %v603_v33, %v607_v0  ;;  %v616_v17 = vrot.slane %v603_v33, %v615_v4 }
  0x74   : > { %727 = vmatprep.mubr.f32.mxu0 %v1343_v10  ;;  %816 = vmatprep.mubr.f32.mxu1 %v1343_v10  ;;  %v574_v51 = vadd.f32 %v572_v2, %v567_v28  ;;  %v620_v8 = vrot.slane %v603_v33, %v619_v59  ;;  %v624_v49 = vrot.slane %v603_v33, %v623_v32 }
  0x75   : > { %865 = vmatprep.subr.mxu0 %v592_v18  ;;  %954 = vmatprep.subr.mxu1 %v594_v46  ;;  %v561_v62 = vadd.f32 %v559_v26, %v554_v53 }
  0x76   : > { %1157 = vmatmul.mubr.msk.f32.gmra.mxu0 %vm429_vm0, %v584_v27  ;;  %1161 = vmatmul.mubr.msk.f32.gmra.mxu1 %vm429_vm0, %v584_v27  ;;  %v577_v11 = vadd.f32 %v576_v22, %v574_v51 }
  0x77   : > { %733 = vmatprep.mubr.f32.mxu0 %v1343_v10  ;;  %822 = vmatprep.mubr.f32.mxu1 %v1343_v10  ;;  %v568_v12 = vadd.f32 %v566_v36, %v561_v62 }
  0x78   : > { %866 = vmatpush1.msra.mxu0 %v591_v52  ;;  %955 = vmatpush1.msra.mxu1 %v593_v41  ;;  %v579_v56 = vmax.f32 %v577_v11, 0.0  ;;  %v636_v52 = vrot.slane %v603_v33, %v635_v45 }
  0x79   : > { %v575_v58 = vadd.f32 %v573_v20, %v568_v12 }
  0x7a   : > { %581 = vst.msk [vmem:[#allocation2 + $0x10] sm:$0xff] %vm429_vm0, %v579_v56 }
  0x7b   : > { %v578_v21 = vadd.f32 %v576_v22, %v575_v58 }
  0x7d   : > { %v580_v60 = vmax.f32 %v578_v21, 0.0 }
  0x7f   : > { %582 = vst.msk [vmem:[#allocation2 + $0x18] sm:$0xff] %vm429_vm0, %v580_v60 }
  0x81   : > { %v585_v48 = vld [vmem:[#allocation2 + $0x10] sm:$0xff] }
  0x82   : > { %1158 = vmatmul.mubr.msk.f32.gmra.mxu0 %vm429_vm0, %v585_v48  ;;  %1162 = vmatmul.mubr.msk.f32.gmra.mxu1 %vm429_vm0, %v585_v48 }
  0x83   : > { %739 = vmatprep.mubr.f32.mxu0 %v1343_v10  ;;  %828 = vmatprep.mubr.f32.mxu1 %v1343_v10 }
  0x86   : > { %v586_v16 = vld [vmem:[#allocation2 + $0x18] sm:$0xff] }
  0x87   : > { %1159 = vmatmul.mubr.msk.f32.gmra.mxu0 %vm429_vm0, %v586_v16  ;;  %1163 = vmatmul.mubr.msk.f32.gmra.mxu1 %vm429_vm0, %v586_v16 }
  0x88   : > { %899 = vmatprep.mubr.f32.mxu0 %v1343_v10  ;;  %988 = vmatprep.mubr.f32.mxu1 %v1343_v10 }
  0x8b   : > { %1164 = vmatmul.mubr.msk.f32.vlgmr.msra.gmra.mxu0 %vm429_vm0, %v583_v44  ;;  %1168 = vmatmul.mubr.msk.f32.vlgmr.msra.gmra.mxu1 %vm429_vm0, %v583_v44  ;;  %v627_v44 = vsub.s32 5, %v1781_v61 }
  0x8c   : > { %905 = vmatprep.mubr.f32.mxu0 %v1343_v10  ;;  %994 = vmatprep.mubr.f32.mxu1 %v1343_v10 }
  0x8d   : > { %v628_v51 = vrot.slane %v603_v33, %v627_v44 }
  0x8f   : > { %1165 = vmatmul.mubr.msk.f32.gmra.mxu0 %vm429_vm0, %v584_v27  ;;  %1169 = vmatmul.mubr.msk.f32.gmra.mxu1 %vm429_vm0, %v584_v27  ;;  %v632_v27 = vrot.slane %v603_v33, %v631_v5 }
  0x90   : > { %911 = vmatprep.mubr.f32.mxu0 %v1343_v10  ;;  %1000 = vmatprep.mubr.f32.mxu1 %v1343_v10 }
  0x93   : > { %1166 = vmatmul.mubr.msk.f32.gmra.mxu0 %vm429_vm0, %v585_v48  ;;  %1170 = vmatmul.mubr.msk.f32.gmra.mxu1 %vm429_vm0, %v585_v48 }
  0x94   : > { %917 = vmatprep.mubr.f32.mxu0 %v1343_v10  ;;  %1006 = vmatprep.mubr.f32.mxu1 %v1343_v10  ;;  %v611_v10 = vsub.s32 1, %v1781_v61 }
  0x96   : > { %v612_v7 = vrot.slane %v603_v33, %v611_v10 }
  0x97   : > { %1167 = vmatmul.mubr.msk.f32.gmra.mxu0 %vm429_vm0, %v586_v16  ;;  %1171 = vmatmul.mubr.msk.f32.gmra.mxu1 %vm429_vm0, %v586_v16 }
 0x132   : > { %v723_v13 = vpop.f32.mrf.mxu0  ;;  %v812_v15 = vpop.f32.mrf.mxu1 }
 0x133   : > { %v724_v25 = vadd.f32 %v723_v13, %v608_v55  ;;  %v813_v57 = vadd.f32 %v812_v15, %v616_v17 }
 0x134   : > { %v725_v29 = vpop.f32.mrf.mxu0  ;;  %v814_v6 = vpop.f32.mrf.mxu1 }
 0x135   : > { %1013 = vst [vmem:[%s1793_s28] sm:$0xff] %v724_v25  ;;  %1015 = vst [vmem:[%s1793_s28 + $0x10] sm:$0xff] %v813_v57  ;;  %v726_v40 = vadd.f32 %v725_v29, %v612_v7  ;;  %v815_v47 = vadd.f32 %v814_v6, %v620_v8 }
 0x136   : > { %v729_v14 = vpop.f32.mrf.mxu0  ;;  %v818_v23 = vpop.f32.mrf.mxu1 }
 0x137   : > { %1014 = vst [vmem:[%s1793_s28 + $0x8] sm:$0xff] %v726_v40  ;;  %1016 = vst [vmem:[%s1793_s28 + $0x18] sm:$0xff] %v815_v47  ;;  %v730_v63 = vadd.f32 %v729_v14, %v608_v55  ;;  %v819_v30 = vadd.f32 %v818_v23, %v616_v17 }
 0x138   : > { %v731_v54 = vpop.f32.mrf.mxu0  ;;  %v820_v24 = vpop.f32.mrf.mxu1 }
 0x139   : > { %1022 = vst [vmem:[%s1793_s28 + $0x40] sm:$0xff] %v730_v63  ;;  %1024 = vst [vmem:[%s1793_s28 + $0x50] sm:$0xff] %v819_v30  ;;  %v732_v31 = vadd.f32 %v731_v54, %v612_v7  ;;  %v821_v35 = vadd.f32 %v820_v24, %v620_v8 }
 0x13b   : > { %1023 = vst [vmem:[%s1793_s28 + $0x48] sm:$0xff] %v732_v31  ;;  %1025 = vst [vmem:[%s1793_s28 + $0x58] sm:$0xff] %v821_v35 }
 0x142   : > { %v735_v3 = vpop.f32.mrf.mxu0  ;;  %v824_v39 = vpop.f32.mrf.mxu1 }
 0x143   : > { %v736_v42 = vadd.f32 %v735_v3, %v608_v55  ;;  %v825_v38 = vadd.f32 %v824_v39, %v616_v17 }
 0x144   : > { %v737_v43 = vpop.f32.mrf.mxu0  ;;  %v826_v1 = vpop.f32.mrf.mxu1 }
 0x145   : > { %1030 = vst [vmem:[%s1793_s28 + $0x80] sm:$0xff] %v736_v42  ;;  %1032 = vst [vmem:[%s1793_s28 + $0x90] sm:$0xff] %v825_v38  ;;  %v738_v19 = vadd.f32 %v737_v43, %v612_v7  ;;  %v827_v34 = vadd.f32 %v826_v1, %v620_v8 }
 0x147   : > { %1031 = vst [vmem:[%s1793_s28 + $0x88] sm:$0xff] %v738_v19  ;;  %1033 = vst [vmem:[%s1793_s28 + $0x98] sm:$0xff] %v827_v34  ;;  %v741_v2 = vpop.f32.mrf.mxu0  ;;  %v830_v18 = vpop.f32.mrf.mxu1 }
 0x148   : > { %v742_v46 = vadd.f32 %v741_v2, %v608_v55  ;;  %v831_v9 = vadd.f32 %v830_v18, %v616_v17 }
 0x149   : > { %v743_v28 = vpop.f32.mrf.mxu0  ;;  %v832_v22 = vpop.f32.mrf.mxu1 }
 0x14a   : > { %1038 = vst [vmem:[%s1793_s28 + $0xc0] sm:$0xff] %v742_v46  ;;  %1040 = vst [vmem:[%s1793_s28 + $0xd0] sm:$0xff] %v831_v9  ;;  %v744_v50 = vadd.f32 %v743_v28, %v612_v7  ;;  %v833_v26 = vadd.f32 %v832_v22, %v620_v8 }
 0x14b   : > { %v901_v41 = vpop.f32.mrf.mxu0  ;;  %v990_v53 = vpop.f32.mrf.mxu1 }
 0x14c   : > { %1039 = vst [vmem:[%s1793_s28 + $0xc8] sm:$0xff] %v744_v50  ;;  %1041 = vst [vmem:[%s1793_s28 + $0xd8] sm:$0xff] %v833_v26  ;;  %v902_v36 = vadd.f32 %v901_v41, %v624_v49  ;;  %v991_v11 = vadd.f32 %v990_v53, %v632_v27 }
 0x14d   : > { %v903_v62 = vpop.f32.mrf.mxu0  ;;  %v992_v20 = vpop.f32.mrf.mxu1 }
 0x14e   : > { %1017 = vst [vmem:[%s1793_s28 + $0x20] sm:$0xff] %v902_v36  ;;  %1019 = vst [vmem:[%s1793_s28 + $0x30] sm:$0xff] %v991_v11  ;;  %v904_v56 = vadd.f32 %v903_v62, %v628_v51  ;;  %v993_v12 = vadd.f32 %v992_v20, %v636_v52 }
 0x14f   : > { %v907_v58 = vpop.f32.mrf.mxu0  ;;  %v996_v21 = vpop.f32.mrf.mxu1 }
 0x150   : > { %1018 = vst [vmem:[%s1793_s28 + $0x28] sm:$0xff] %v904_v56  ;;  %1021 = vst.msk [vmem:[%s1793_s28 + $0x38] sm:$0xff] %vm1020_vm1, %v993_v12  ;;  %v908_v60 = vadd.f32 %v907_v58, %v624_v49  ;;  %v997_v48 = vadd.f32 %v996_v21, %v632_v27 }
 0x151   : > { %v909_v16 = vpop.f32.mrf.mxu0  ;;  %v998_v37 = vpop.f32.mrf.mxu1 }
 0x152   : > { %1026 = vst [vmem:[%s1793_s28 + $0x60] sm:$0xff] %v908_v60  ;;  %1028 = vst [vmem:[%s1793_s28 + $0x70] sm:$0xff] %v997_v48  ;;  %v910_v61 = vadd.f32 %v909_v16, %v628_v51  ;;  %v999_v0 = vadd.f32 %v998_v37, %v636_v52 }
 0x153   : > { %v913_v4 = vpop.f32.mrf.mxu0  ;;  %v1002_v33 = vpop.f32.mrf.mxu1 }
 0x154   : > { %1027 = vst [vmem:[%s1793_s28 + $0x68] sm:$0xff] %v910_v61  ;;  %1029 = vst.msk [vmem:[%s1793_s28 + $0x78] sm:$0xff] %vm1020_vm1, %v999_v0  ;;  %v914_v10 = vadd.f32 %v913_v4, %v624_v49  ;;  %v1003_v59 = vadd.f32 %v1002_v33, %v632_v27 }
 0x155   : > { %v915_v55 = vpop.f32.mrf.mxu0  ;;  %v1004_v17 = vpop.f32.mrf.mxu1 }
 0x156   : > { %1034 = vst [vmem:[%s1793_s28 + $0xa0] sm:$0xff] %v914_v10  ;;  %1036 = vst [vmem:[%s1793_s28 + $0xb0] sm:$0xff] %v1003_v59  ;;  %v916_v7 = vadd.f32 %v915_v55, %v628_v51  ;;  %v1005_v8 = vadd.f32 %v1004_v17, %v636_v52 }
 0x157   : > { %v919_v13 = vpop.f32.mrf.mxu0  ;;  %v1008_v15 = vpop.f32.mrf.mxu1 }
 0x158   : > { %1035 = vst [vmem:[%s1793_s28 + $0xa8] sm:$0xff] %v916_v7  ;;  %1037 = vst.msk [vmem:[%s1793_s28 + $0xb8] sm:$0xff] %vm1020_vm1, %v1005_v8  ;;  %v920_v25 = vadd.f32 %v919_v13, %v624_v49  ;;  %v1009_v57 = vadd.f32 %v1008_v15, %v632_v27 }
 0x159   : > { %v921_v29 = vpop.f32.mrf.mxu0  ;;  %v1010_v6 = vpop.f32.mrf.mxu1 }
 0x15a   : > { %1042 = vst [vmem:[%s1793_s28 + $0xe0] sm:$0xff] %v920_v25  ;;  %1044 = vst [vmem:[%s1793_s28 + $0xf0] sm:$0xff] %v1009_v57  ;;  %v922_v40 = vadd.f32 %v921_v29, %v628_v51  ;;  %v1011_v47 = vadd.f32 %v1010_v6, %v636_v52 }
 0x15c   : > { %1043 = vst [vmem:[%s1793_s28 + $0xe8] sm:$0xff] %v922_v40  ;;  %1045 = vst.msk [vmem:[%s1793_s28 + $0xf8] sm:$0xff] %vm1020_vm1, %v1011_v47 }
 0x15d PF: > { %s19_s18 = sadd.s32 1, %s1333_s18  }
 0x15e   : > { %p16_p3 = scmp.ge.s32.totalorder %s19_s18, 10  }
 0x160   :  { %18 = sbr.rel (!%p16_p3) target bundleno = 4 (0x4), region = 101 }
 0x165   :  { %1070 = vsyncpa [#allocation4], 1 }
 0x166   :  { %1072 = vsyncpa [#allocation4 + $0x1], 1 }
 0x167   :  { %1073 = vsyncpa [#allocation10], 1 }
 0x168   :  { %1074 = vsyncpa [#allocation5], 1 }
 0x169   :  { %1076 = vsyncpa [#allocation5 + $0x1], 1 }
 0x16a   :  { %1077 = vsyncpa [#allocation6], 1 }
 0x16b   :  { %1079 = vsyncpa [#allocation6 + $0x1], 1 }

</bundles_post_ra>
